<compile_context>
chip_gen: v7x
topology: tpu7x:2x2x1
jax: 0.10.0
libtpu: 0.0.40
codegen_flags: <defaults>
</compile_context>

<pallas_src>
import math

import jax
import jax.numpy as jnp
from jax.experimental import pallas as pl
from jax.experimental.pallas import tpu as pltpu


# ----------------------------- problem sizes ---------------------------------
D_IN, H, D_OUT = 32, 32, 8      # wrapped MLP
INTRINSIC = 16                  # intrinsic_dimension
HALF = INTRINSIC // 2
BATCH = 2

PARAM_SHAPES = [
    ("fc1.weight", (H, D_IN)),
    ("fc1.bias",   (H,)),
    ("fc2.weight", (D_OUT, H)),
    ("fc2.bias",   (D_OUT,)),
]
FULL_DIM = sum(math.prod(s) for _, s in PARAM_SHAPES)   # = 1320


# ----------------------------- fused Pallas kernel ----------------------------
def fused_kernel(theta_ref,     # (INTRINSIC,)                       SMEM
                 x_ref,         # (B, D_IN)                          VMEM
                 c1_ref,        # (INTRINSIC+1, D_IN+1, H)           VMEM  [k<16]=proj slab, [16]=init
                 c2_ref,        # (INTRINSIC+1, H+1, D_OUT)          VMEM  (bias folded as last row)
                 o_ref):        # (B, D_OUT)                         VMEM
    t = theta_ref

    # delta = sum_k theta[k] * P[k], accumulated in two independent halves to cut the serial
    # FMA-chain latency (total body is ~100 cycles, so chain depth is a visible fraction).
    d1_lo = t[0] * c1_ref[0]
    d1_hi = t[HALF] * c1_ref[HALF]
    d2_lo = t[0] * c2_ref[0]
    d2_hi = t[HALF] * c2_ref[HALF]
    for k in range(1, HALF):
        d1_lo = d1_lo + t[k] * c1_ref[k]
        d1_hi = d1_hi + t[k + HALF] * c1_ref[k + HALF]
        d2_lo = d2_lo + t[k] * c2_ref[k]
        d2_hi = d2_hi + t[k + HALF] * c2_ref[k + HALF]

    # init slab added once at the end.
    w1aug = c1_ref[INTRINSIC] + (d1_lo + d1_hi)   # (D_IN+1, H):  rows 0..D_IN-1 = W1^T, row D_IN = b1
    w2aug = c2_ref[INTRINSIC] + (d2_lo + d2_hi)   # (H+1, D_OUT): rows 0..H-1    = W2^T, row H    = b2

    # wrapped module forward:  y = relu(x @ W1^T + b1) @ W2^T + b2
    x = x_ref[...]
    h = jnp.dot(x, w1aug[:D_IN, :], preferred_element_type=jnp.float32) + w1aug[D_IN:, :]
    h = jnp.maximum(h, 0.0)
    y = jnp.dot(h, w2aug[:H, :], preferred_element_type=jnp.float32) + w2aug[H:, :]
    o_ref[...] = y.astype(o_ref.dtype)


# ------------------------ one-time constant preparation -----------------------
def build_projection_constants(proj, init_flat):
    """Pre-split, pre-transpose, bias-fold and stack the constant projection matrices / initial
    values per layer.  Done once outside the hot path (mirrors the PyTorch ctor's pre-slicing of
    Proj into random_matrix[name]); the kernel then does zero layout plumbing and gets exactly
    two constant arrays."""
    off = 0

    # fc1.weight  (PyTorch (H, D_IN)) -> kernel wants W1^T (D_IN, H)
    n = H * D_IN
    p = proj[off:off + n].reshape(H, D_IN, INTRINSIC)              # = random_matrix['fc1.weight']
    p_w1t = jnp.transpose(p, (2, 1, 0))                            # (d, D_IN, H)
    w1t0 = init_flat[off:off + n].reshape(H, D_IN).T               # (D_IN, H)
    off += n

    # fc1.bias
    n = H
    p_b1 = proj[off:off + n].reshape(H, INTRINSIC).T.reshape(INTRINSIC, 1, H)
    b10 = init_flat[off:off + n].reshape(1, H)
    off += n

    # fc2.weight  (PyTorch (D_OUT, H)) -> kernel wants W2^T (H, D_OUT)
    n = D_OUT * H
    p = proj[off:off + n].reshape(D_OUT, H, INTRINSIC)             # = random_matrix['fc2.weight']
    p_w2t = jnp.transpose(p, (2, 1, 0))                            # (d, H, D_OUT)
    w2t0 = init_flat[off:off + n].reshape(D_OUT, H).T              # (H, D_OUT)
    off += n

    # fc2.bias
    n = D_OUT
    p_b2 = proj[off:off + n].reshape(D_OUT, INTRINSIC).T.reshape(INTRINSIC, 1, D_OUT)
    b20 = init_flat[off:off + n].reshape(1, D_OUT)
    off += n
    assert off == FULL_DIM

    # Augmented-bias fold + stack init as slice [INTRINSIC]:
    #   c1[k, :D_IN, :] = P_w1t[k], c1[k, D_IN, :] = P_b1[k];  c1[INTRINSIC] = [W1_0^T ; b1_0]
    c1_proj = jnp.concatenate([p_w1t, p_b1], axis=1)               # (d, D_IN+1, H)
    c1_init = jnp.concatenate([w1t0, b10], axis=0)[None]           # (1, D_IN+1, H)
    c1 = jnp.concatenate([c1_proj, c1_init], axis=0)               # (d+1, D_IN+1, H)

    c2_proj = jnp.concatenate([p_w2t, p_b2], axis=1)               # (d, H+1, D_OUT)
    c2_init = jnp.concatenate([w2t0, b20], axis=0)[None]           # (1, H+1, D_OUT)
    c2 = jnp.concatenate([c2_proj, c2_init], axis=0)               # (d+1, H+1, D_OUT)

    return {"c1": c1, "c2": c2}


# ------------------------- ProjectionWrap forward ------------------------------
def make_projection_wrap_forward(consts):
    c1 = consts["c1"]
    c2 = consts["c2"]
    vmem = pl.BlockSpec(memory_space=pltpu.MemorySpace.VMEM)
    smem = pl.BlockSpec(memory_space=pltpu.MemorySpace.SMEM)

    @jax.jit
    def forward(x, theta_flat):     # theta_flat: (INTRINSIC,)
        B = x.shape[0]
        return pl.pallas_call(
            fused_kernel,
            out_shape=jax.ShapeDtypeStruct((B, D_OUT), jnp.float32),
            in_specs=[smem, vmem, vmem, vmem],
            out_specs=vmem,
        )(theta_flat, x, c1, c2)

    return forward


# ------------------------------- reference -------------------------------------
def reference_forward(x, proj, theta, init_flat):
    flat = init_flat + (proj @ theta)[:, 0]
    params, off = {}, 0
    for name, shape in PARAM_SHAPES:
        n = math.prod(shape)
        params[name] = flat[off:off + n].reshape(shape)
        off += n
    h = jnp.maximum(x @ params["fc1.weight"].T + params["fc1.bias"], 0.0)
    return h @ params["fc2.weight"].T + params["fc2.bias"]


# --------------------------------- main -----------------------------------------
if __name__ == "__main__":
    key = jax.random.PRNGKey(0)
    k_w1, k_b1, k_w2, k_b2, k_proj, k_theta, k_x = jax.random.split(key, 7)

    # Deterministic "initial_value" of the wrapped module's parameters (flat, row-major,
    # same order as named_parameters in the PyTorch module).
    w1_0 = jax.random.normal(k_w1, (H, D_IN), jnp.float32) * 0.1
    b1_0 = jax.random.normal(k_b1, (H,), jnp.float32) * 0.1
    w2_0 = jax.random.normal(k_w2, (D_OUT, H), jnp.float32) * 0.1
    b2_0 = jax.random.normal(k_b2, (D_OUT,), jnp.float32) * 0.1
    init_flat = jnp.concatenate(
        [w1_0.reshape(-1), b1_0.reshape(-1), w2_0.reshape(-1), b2_0.reshape(-1)]
    )                                                           # (FULL_DIM,)

    # Proj in the PyTorch ctor is (intrinsic, full); self.Proj = Proj.t() -> (full, intrinsic).
    proj = jax.random.normal(k_proj, (FULL_DIM, INTRINSIC), jnp.float32) / math.sqrt(FULL_DIM)

    # __init__ initializes theta to zeros((intrinsic, 1)); use a nonzero deterministic theta so the
    # projection path is actually exercised (forward semantics are identical).
    theta = jax.random.normal(k_theta, (INTRINSIC, 1), jnp.float32) * 0.5
    theta_flat = jnp.reshape(theta, (INTRINSIC,))               # one-time reshape (not per-call glue)

    x = jax.random.normal(k_x, (BATCH, D_IN), jnp.float32)

    # One-time setup (mirrors the PyTorch ctor's pre-slicing of Proj into random_matrix[name]).
    consts = build_projection_constants(proj, init_flat)
    forward = make_projection_wrap_forward(consts)

    y = forward(x, theta_flat)
    y = jax.block_until_ready(y)

    y_ref = reference_forward(x, proj, theta, init_flat)
    assert y.shape == (BATCH, D_OUT)
    assert jnp.allclose(y, y_ref, atol=1e-4, rtol=1e-4), "mismatch vs plain-JAX reference"

    print("KERNEL_OK")
</pallas_src>

<mosaic_0001>
module attributes {stable_mosaic.version = 11 : i64} {
  func.func @fused_kernel(%arg0: memref<16xf32, #tpu.memory_space<smem>>, %arg1: memref<2x32xf32, #tpu.memory_space<vmem>>, %arg2: memref<17x33x32xf32, #tpu.memory_space<vmem>>, %arg3: memref<17x33x8xf32, #tpu.memory_space<vmem>>, %arg4: memref<2x8xf32, #tpu.memory_space<vmem>>) attributes {dimension_semantics = [], scalar_prefetch = 0 : i64, scratch_operands = 0 : i64, tpu.core_type = #tpu.core_type<tc>} {
    %c0 = arith.constant 0 : index
    %0 = memref.load %arg0[%c0] : memref<16xf32, #tpu.memory_space<smem>>
    %c0_0 = arith.constant 0 : index
    %c0_1 = arith.constant 0 : index
    %c0_2 = arith.constant 0 : index
    %1 = vector.load %arg2[%c0_0, %c0_1, %c0_2] : memref<17x33x32xf32, #tpu.memory_space<vmem>>, vector<1x33x32xf32>
    %2 = vector.shape_cast %1 : vector<1x33x32xf32> to vector<33x32xf32>
    %3 = vector.broadcast %0 : f32 to vector<33x32xf32>
    %4 = arith.mulf %3, %2 : vector<33x32xf32>
    %c8 = arith.constant 8 : index
    %5 = memref.load %arg0[%c8] : memref<16xf32, #tpu.memory_space<smem>>
    %c8_3 = arith.constant 8 : index
    %c0_4 = arith.constant 0 : index
    %c0_5 = arith.constant 0 : index
    %6 = vector.load %arg2[%c8_3, %c0_4, %c0_5] : memref<17x33x32xf32, #tpu.memory_space<vmem>>, vector<1x33x32xf32>
    %7 = vector.shape_cast %6 : vector<1x33x32xf32> to vector<33x32xf32>
    %8 = vector.broadcast %5 : f32 to vector<33x32xf32>
    %9 = arith.mulf %8, %7 : vector<33x32xf32>
    %c0_6 = arith.constant 0 : index
    %10 = memref.load %arg0[%c0_6] : memref<16xf32, #tpu.memory_space<smem>>
    %c0_7 = arith.constant 0 : index
    %c0_8 = arith.constant 0 : index
    %c0_9 = arith.constant 0 : index
    %11 = vector.load %arg3[%c0_7, %c0_8, %c0_9] : memref<17x33x8xf32, #tpu.memory_space<vmem>>, vector<1x33x8xf32>
    %12 = vector.shape_cast %11 : vector<1x33x8xf32> to vector<33x8xf32>
    %13 = vector.broadcast %10 : f32 to vector<33x8xf32>
    %14 = arith.mulf %13, %12 : vector<33x8xf32>
    %c8_10 = arith.constant 8 : index
    %15 = memref.load %arg0[%c8_10] : memref<16xf32, #tpu.memory_space<smem>>
    %c8_11 = arith.constant 8 : index
    %c0_12 = arith.constant 0 : index
    %c0_13 = arith.constant 0 : index
    %16 = vector.load %arg3[%c8_11, %c0_12, %c0_13] : memref<17x33x8xf32, #tpu.memory_space<vmem>>, vector<1x33x8xf32>
    %17 = vector.shape_cast %16 : vector<1x33x8xf32> to vector<33x8xf32>
    %18 = vector.broadcast %15 : f32 to vector<33x8xf32>
    %19 = arith.mulf %18, %17 : vector<33x8xf32>
    %c1 = arith.constant 1 : index
    %20 = memref.load %arg0[%c1] : memref<16xf32, #tpu.memory_space<smem>>
    %c1_14 = arith.constant 1 : index
    %c0_15 = arith.constant 0 : index
    %c0_16 = arith.constant 0 : index
    %21 = vector.load %arg2[%c1_14, %c0_15, %c0_16] : memref<17x33x32xf32, #tpu.memory_space<vmem>>, vector<1x33x32xf32>
    %22 = vector.shape_cast %21 : vector<1x33x32xf32> to vector<33x32xf32>
    %23 = vector.broadcast %20 : f32 to vector<33x32xf32>
    %24 = arith.mulf %23, %22 : vector<33x32xf32>
    %25 = arith.addf %4, %24 : vector<33x32xf32>
    %c9 = arith.constant 9 : index
    %26 = memref.load %arg0[%c9] : memref<16xf32, #tpu.memory_space<smem>>
    %c9_17 = arith.constant 9 : index
    %c0_18 = arith.constant 0 : index
    %c0_19 = arith.constant 0 : index
    %27 = vector.load %arg2[%c9_17, %c0_18, %c0_19] : memref<17x33x32xf32, #tpu.memory_space<vmem>>, vector<1x33x32xf32>
    %28 = vector.shape_cast %27 : vector<1x33x32xf32> to vector<33x32xf32>
    %29 = vector.broadcast %26 : f32 to vector<33x32xf32>
    %30 = arith.mulf %29, %28 : vector<33x32xf32>
    %31 = arith.addf %9, %30 : vector<33x32xf32>
    %c1_20 = arith.constant 1 : index
    %32 = memref.load %arg0[%c1_20] : memref<16xf32, #tpu.memory_space<smem>>
    %c1_21 = arith.constant 1 : index
    %c0_22 = arith.constant 0 : index
    %c0_23 = arith.constant 0 : index
    %33 = vector.load %arg3[%c1_21, %c0_22, %c0_23] : memref<17x33x8xf32, #tpu.memory_space<vmem>>, vector<1x33x8xf32>
    %34 = vector.shape_cast %33 : vector<1x33x8xf32> to vector<33x8xf32>
    %35 = vector.broadcast %32 : f32 to vector<33x8xf32>
    %36 = arith.mulf %35, %34 : vector<33x8xf32>
    %37 = arith.addf %14, %36 : vector<33x8xf32>
    %c9_24 = arith.constant 9 : index
    %38 = memref.load %arg0[%c9_24] : memref<16xf32, #tpu.memory_space<smem>>
    %c9_25 = arith.constant 9 : index
    %c0_26 = arith.constant 0 : index
    %c0_27 = arith.constant 0 : index
    %39 = vector.load %arg3[%c9_25, %c0_26, %c0_27] : memref<17x33x8xf32, #tpu.memory_space<vmem>>, vector<1x33x8xf32>
    %40 = vector.shape_cast %39 : vector<1x33x8xf32> to vector<33x8xf32>
    %41 = vector.broadcast %38 : f32 to vector<33x8xf32>
    %42 = arith.mulf %41, %40 : vector<33x8xf32>
    %43 = arith.addf %19, %42 : vector<33x8xf32>
    %c2 = arith.constant 2 : index
    %44 = memref.load %arg0[%c2] : memref<16xf32, #tpu.memory_space<smem>>
    %c2_28 = arith.constant 2 : index
    %c0_29 = arith.constant 0 : index
    %c0_30 = arith.constant 0 : index
    %45 = vector.load %arg2[%c2_28, %c0_29, %c0_30] : memref<17x33x32xf32, #tpu.memory_space<vmem>>, vector<1x33x32xf32>
    %46 = vector.shape_cast %45 : vector<1x33x32xf32> to vector<33x32xf32>
    %47 = vector.broadcast %44 : f32 to vector<33x32xf32>
    %48 = arith.mulf %47, %46 : vector<33x32xf32>
    %49 = arith.addf %25, %48 : vector<33x32xf32>
    %c10 = arith.constant 10 : index
    %50 = memref.load %arg0[%c10] : memref<16xf32, #tpu.memory_space<smem>>
    %c10_31 = arith.constant 10 : index
    %c0_32 = arith.constant 0 : index
    %c0_33 = arith.constant 0 : index
    %51 = vector.load %arg2[%c10_31, %c0_32, %c0_33] : memref<17x33x32xf32, #tpu.memory_space<vmem>>, vector<1x33x32xf32>
    %52 = vector.shape_cast %51 : vector<1x33x32xf32> to vector<33x32xf32>
    %53 = vector.broadcast %50 : f32 to vector<33x32xf32>
    %54 = arith.mulf %53, %52 : vector<33x32xf32>
    %55 = arith.addf %31, %54 : vector<33x32xf32>
    %c2_34 = arith.constant 2 : index
    %56 = memref.load %arg0[%c2_34] : memref<16xf32, #tpu.memory_space<smem>>
    %c2_35 = arith.constant 2 : index
    %c0_36 = arith.constant 0 : index
    %c0_37 = arith.constant 0 : index
    %57 = vector.load %arg3[%c2_35, %c0_36, %c0_37] : memref<17x33x8xf32, #tpu.memory_space<vmem>>, vector<1x33x8xf32>
    %58 = vector.shape_cast %57 : vector<1x33x8xf32> to vector<33x8xf32>
    %59 = vector.broadcast %56 : f32 to vector<33x8xf32>
    %60 = arith.mulf %59, %58 : vector<33x8xf32>
    %61 = arith.addf %37, %60 : vector<33x8xf32>
    %c10_38 = arith.constant 10 : index
    %62 = memref.load %arg0[%c10_38] : memref<16xf32, #tpu.memory_space<smem>>
    %c10_39 = arith.constant 10 : index
    %c0_40 = arith.constant 0 : index
    %c0_41 = arith.constant 0 : index
    %63 = vector.load %arg3[%c10_39, %c0_40, %c0_41] : memref<17x33x8xf32, #tpu.memory_space<vmem>>, vector<1x33x8xf32>
    %64 = vector.shape_cast %63 : vector<1x33x8xf32> to vector<33x8xf32>
    %65 = vector.broadcast %62 : f32 to vector<33x8xf32>
    %66 = arith.mulf %65, %64 : vector<33x8xf32>
    %67 = arith.addf %43, %66 : vector<33x8xf32>
    %c3 = arith.constant 3 : index
    %68 = memref.load %arg0[%c3] : memref<16xf32, #tpu.memory_space<smem>>
    %c3_42 = arith.constant 3 : index
    %c0_43 = arith.constant 0 : index
    %c0_44 = arith.constant 0 : index
    %69 = vector.load %arg2[%c3_42, %c0_43, %c0_44] : memref<17x33x32xf32, #tpu.memory_space<vmem>>, vector<1x33x32xf32>
    %70 = vector.shape_cast %69 : vector<1x33x32xf32> to vector<33x32xf32>
    %71 = vector.broadcast %68 : f32 to vector<33x32xf32>
    %72 = arith.mulf %71, %70 : vector<33x32xf32>
    %73 = arith.addf %49, %72 : vector<33x32xf32>
    %c11 = arith.constant 11 : index
    %74 = memref.load %arg0[%c11] : memref<16xf32, #tpu.memory_space<smem>>
    %c11_45 = arith.constant 11 : index
    %c0_46 = arith.constant 0 : index
    %c0_47 = arith.constant 0 : index
    %75 = vector.load %arg2[%c11_45, %c0_46, %c0_47] : memref<17x33x32xf32, #tpu.memory_space<vmem>>, vector<1x33x32xf32>
    %76 = vector.shape_cast %75 : vector<1x33x32xf32> to vector<33x32xf32>
    %77 = vector.broadcast %74 : f32 to vector<33x32xf32>
    %78 = arith.mulf %77, %76 : vector<33x32xf32>
    %79 = arith.addf %55, %78 : vector<33x32xf32>
    %c3_48 = arith.constant 3 : index
    %80 = memref.load %arg0[%c3_48] : memref<16xf32, #tpu.memory_space<smem>>
    %c3_49 = arith.constant 3 : index
    %c0_50 = arith.constant 0 : index
    %c0_51 = arith.constant 0 : index
    %81 = vector.load %arg3[%c3_49, %c0_50, %c0_51] : memref<17x33x8xf32, #tpu.memory_space<vmem>>, vector<1x33x8xf32>
    %82 = vector.shape_cast %81 : vector<1x33x8xf32> to vector<33x8xf32>
    %83 = vector.broadcast %80 : f32 to vector<33x8xf32>
    %84 = arith.mulf %83, %82 : vector<33x8xf32>
    %85 = arith.addf %61, %84 : vector<33x8xf32>
    %c11_52 = arith.constant 11 : index
    %86 = memref.load %arg0[%c11_52] : memref<16xf32, #tpu.memory_space<smem>>
    %c11_53 = arith.constant 11 : index
    %c0_54 = arith.constant 0 : index
    %c0_55 = arith.constant 0 : index
    %87 = vector.load %arg3[%c11_53, %c0_54, %c0_55] : memref<17x33x8xf32, #tpu.memory_space<vmem>>, vector<1x33x8xf32>
    %88 = vector.shape_cast %87 : vector<1x33x8xf32> to vector<33x8xf32>
    %89 = vector.broadcast %86 : f32 to vector<33x8xf32>
    %90 = arith.mulf %89, %88 : vector<33x8xf32>
    %91 = arith.addf %67, %90 : vector<33x8xf32>
    %c4 = arith.constant 4 : index
    %92 = memref.load %arg0[%c4] : memref<16xf32, #tpu.memory_space<smem>>
    %c4_56 = arith.constant 4 : index
    %c0_57 = arith.constant 0 : index
    %c0_58 = arith.constant 0 : index
    %93 = vector.load %arg2[%c4_56, %c0_57, %c0_58] : memref<17x33x32xf32, #tpu.memory_space<vmem>>, vector<1x33x32xf32>
    %94 = vector.shape_cast %93 : vector<1x33x32xf32> to vector<33x32xf32>
    %95 = vector.broadcast %92 : f32 to vector<33x32xf32>
    %96 = arith.mulf %95, %94 : vector<33x32xf32>
    %97 = arith.addf %73, %96 : vector<33x32xf32>
    %c12 = arith.constant 12 : index
    %98 = memref.load %arg0[%c12] : memref<16xf32, #tpu.memory_space<smem>>
    %c12_59 = arith.constant 12 : index
    %c0_60 = arith.constant 0 : index
    %c0_61 = arith.constant 0 : index
    %99 = vector.load %arg2[%c12_59, %c0_60, %c0_61] : memref<17x33x32xf32, #tpu.memory_space<vmem>>, vector<1x33x32xf32>
    %100 = vector.shape_cast %99 : vector<1x33x32xf32> to vector<33x32xf32>
    %101 = vector.broadcast %98 : f32 to vector<33x32xf32>
    %102 = arith.mulf %101, %100 : vector<33x32xf32>
    %103 = arith.addf %79, %102 : vector<33x32xf32>
    %c4_62 = arith.constant 4 : index
    %104 = memref.load %arg0[%c4_62] : memref<16xf32, #tpu.memory_space<smem>>
    %c4_63 = arith.constant 4 : index
    %c0_64 = arith.constant 0 : index
    %c0_65 = arith.constant 0 : index
    %105 = vector.load %arg3[%c4_63, %c0_64, %c0_65] : memref<17x33x8xf32, #tpu.memory_space<vmem>>, vector<1x33x8xf32>
    %106 = vector.shape_cast %105 : vector<1x33x8xf32> to vector<33x8xf32>
    %107 = vector.broadcast %104 : f32 to vector<33x8xf32>
    %108 = arith.mulf %107, %106 : vector<33x8xf32>
    %109 = arith.addf %85, %108 : vector<33x8xf32>
    %c12_66 = arith.constant 12 : index
    %110 = memref.load %arg0[%c12_66] : memref<16xf32, #tpu.memory_space<smem>>
    %c12_67 = arith.constant 12 : index
    %c0_68 = arith.constant 0 : index
    %c0_69 = arith.constant 0 : index
    %111 = vector.load %arg3[%c12_67, %c0_68, %c0_69] : memref<17x33x8xf32, #tpu.memory_space<vmem>>, vector<1x33x8xf32>
    %112 = vector.shape_cast %111 : vector<1x33x8xf32> to vector<33x8xf32>
    %113 = vector.broadcast %110 : f32 to vector<33x8xf32>
    %114 = arith.mulf %113, %112 : vector<33x8xf32>
    %115 = arith.addf %91, %114 : vector<33x8xf32>
    %c5 = arith.constant 5 : index
    %116 = memref.load %arg0[%c5] : memref<16xf32, #tpu.memory_space<smem>>
    %c5_70 = arith.constant 5 : index
    %c0_71 = arith.constant 0 : index
    %c0_72 = arith.constant 0 : index
    %117 = vector.load %arg2[%c5_70, %c0_71, %c0_72] : memref<17x33x32xf32, #tpu.memory_space<vmem>>, vector<1x33x32xf32>
    %118 = vector.shape_cast %117 : vector<1x33x32xf32> to vector<33x32xf32>
    %119 = vector.broadcast %116 : f32 to vector<33x32xf32>
    %120 = arith.mulf %119, %118 : vector<33x32xf32>
    %121 = arith.addf %97, %120 : vector<33x32xf32>
    %c13 = arith.constant 13 : index
    %122 = memref.load %arg0[%c13] : memref<16xf32, #tpu.memory_space<smem>>
    %c13_73 = arith.constant 13 : index
    %c0_74 = arith.constant 0 : index
    %c0_75 = arith.constant 0 : index
    %123 = vector.load %arg2[%c13_73, %c0_74, %c0_75] : memref<17x33x32xf32, #tpu.memory_space<vmem>>, vector<1x33x32xf32>
    %124 = vector.shape_cast %123 : vector<1x33x32xf32> to vector<33x32xf32>
    %125 = vector.broadcast %122 : f32 to vector<33x32xf32>
    %126 = arith.mulf %125, %124 : vector<33x32xf32>
    %127 = arith.addf %103, %126 : vector<33x32xf32>
    %c5_76 = arith.constant 5 : index
    %128 = memref.load %arg0[%c5_76] : memref<16xf32, #tpu.memory_space<smem>>
    %c5_77 = arith.constant 5 : index
    %c0_78 = arith.constant 0 : index
    %c0_79 = arith.constant 0 : index
    %129 = vector.load %arg3[%c5_77, %c0_78, %c0_79] : memref<17x33x8xf32, #tpu.memory_space<vmem>>, vector<1x33x8xf32>
    %130 = vector.shape_cast %129 : vector<1x33x8xf32> to vector<33x8xf32>
    %131 = vector.broadcast %128 : f32 to vector<33x8xf32>
    %132 = arith.mulf %131, %130 : vector<33x8xf32>
    %133 = arith.addf %109, %132 : vector<33x8xf32>
    %c13_80 = arith.constant 13 : index
    %134 = memref.load %arg0[%c13_80] : memref<16xf32, #tpu.memory_space<smem>>
    %c13_81 = arith.constant 13 : index
    %c0_82 = arith.constant 0 : index
    %c0_83 = arith.constant 0 : index
    %135 = vector.load %arg3[%c13_81, %c0_82, %c0_83] : memref<17x33x8xf32, #tpu.memory_space<vmem>>, vector<1x33x8xf32>
    %136 = vector.shape_cast %135 : vector<1x33x8xf32> to vector<33x8xf32>
    %137 = vector.broadcast %134 : f32 to vector<33x8xf32>
    %138 = arith.mulf %137, %136 : vector<33x8xf32>
    %139 = arith.addf %115, %138 : vector<33x8xf32>
    %c6 = arith.constant 6 : index
    %140 = memref.load %arg0[%c6] : memref<16xf32, #tpu.memory_space<smem>>
    %c6_84 = arith.constant 6 : index
    %c0_85 = arith.constant 0 : index
    %c0_86 = arith.constant 0 : index
    %141 = vector.load %arg2[%c6_84, %c0_85, %c0_86] : memref<17x33x32xf32, #tpu.memory_space<vmem>>, vector<1x33x32xf32>
    %142 = vector.shape_cast %141 : vector<1x33x32xf32> to vector<33x32xf32>
    %143 = vector.broadcast %140 : f32 to vector<33x32xf32>
    %144 = arith.mulf %143, %142 : vector<33x32xf32>
    %145 = arith.addf %121, %144 : vector<33x32xf32>
    %c14 = arith.constant 14 : index
    %146 = memref.load %arg0[%c14] : memref<16xf32, #tpu.memory_space<smem>>
    %c14_87 = arith.constant 14 : index
    %c0_88 = arith.constant 0 : index
    %c0_89 = arith.constant 0 : index
    %147 = vector.load %arg2[%c14_87, %c0_88, %c0_89] : memref<17x33x32xf32, #tpu.memory_space<vmem>>, vector<1x33x32xf32>
    %148 = vector.shape_cast %147 : vector<1x33x32xf32> to vector<33x32xf32>
    %149 = vector.broadcast %146 : f32 to vector<33x32xf32>
    %150 = arith.mulf %149, %148 : vector<33x32xf32>
    %151 = arith.addf %127, %150 : vector<33x32xf32>
    %c6_90 = arith.constant 6 : index
    %152 = memref.load %arg0[%c6_90] : memref<16xf32, #tpu.memory_space<smem>>
    %c6_91 = arith.constant 6 : index
    %c0_92 = arith.constant 0 : index
    %c0_93 = arith.constant 0 : index
    %153 = vector.load %arg3[%c6_91, %c0_92, %c0_93] : memref<17x33x8xf32, #tpu.memory_space<vmem>>, vector<1x33x8xf32>
    %154 = vector.shape_cast %153 : vector<1x33x8xf32> to vector<33x8xf32>
    %155 = vector.broadcast %152 : f32 to vector<33x8xf32>
    %156 = arith.mulf %155, %154 : vector<33x8xf32>
    %157 = arith.addf %133, %156 : vector<33x8xf32>
    %c14_94 = arith.constant 14 : index
    %158 = memref.load %arg0[%c14_94] : memref<16xf32, #tpu.memory_space<smem>>
    %c14_95 = arith.constant 14 : index
    %c0_96 = arith.constant 0 : index
    %c0_97 = arith.constant 0 : index
    %159 = vector.load %arg3[%c14_95, %c0_96, %c0_97] : memref<17x33x8xf32, #tpu.memory_space<vmem>>, vector<1x33x8xf32>
    %160 = vector.shape_cast %159 : vector<1x33x8xf32> to vector<33x8xf32>
    %161 = vector.broadcast %158 : f32 to vector<33x8xf32>
    %162 = arith.mulf %161, %160 : vector<33x8xf32>
    %163 = arith.addf %139, %162 : vector<33x8xf32>
    %c7 = arith.constant 7 : index
    %164 = memref.load %arg0[%c7] : memref<16xf32, #tpu.memory_space<smem>>
    %c7_98 = arith.constant 7 : index
    %c0_99 = arith.constant 0 : index
    %c0_100 = arith.constant 0 : index
    %165 = vector.load %arg2[%c7_98, %c0_99, %c0_100] : memref<17x33x32xf32, #tpu.memory_space<vmem>>, vector<1x33x32xf32>
    %166 = vector.shape_cast %165 : vector<1x33x32xf32> to vector<33x32xf32>
    %167 = vector.broadcast %164 : f32 to vector<33x32xf32>
    %168 = arith.mulf %167, %166 : vector<33x32xf32>
    %169 = arith.addf %145, %168 : vector<33x32xf32>
    %c15 = arith.constant 15 : index
    %170 = memref.load %arg0[%c15] : memref<16xf32, #tpu.memory_space<smem>>
    %c15_101 = arith.constant 15 : index
    %c0_102 = arith.constant 0 : index
    %c0_103 = arith.constant 0 : index
    %171 = vector.load %arg2[%c15_101, %c0_102, %c0_103] : memref<17x33x32xf32, #tpu.memory_space<vmem>>, vector<1x33x32xf32>
    %172 = vector.shape_cast %171 : vector<1x33x32xf32> to vector<33x32xf32>
    %173 = vector.broadcast %170 : f32 to vector<33x32xf32>
    %174 = arith.mulf %173, %172 : vector<33x32xf32>
    %175 = arith.addf %151, %174 : vector<33x32xf32>
    %c7_104 = arith.constant 7 : index
    %176 = memref.load %arg0[%c7_104] : memref<16xf32, #tpu.memory_space<smem>>
    %c7_105 = arith.constant 7 : index
    %c0_106 = arith.constant 0 : index
    %c0_107 = arith.constant 0 : index
    %177 = vector.load %arg3[%c7_105, %c0_106, %c0_107] : memref<17x33x8xf32, #tpu.memory_space<vmem>>, vector<1x33x8xf32>
    %178 = vector.shape_cast %177 : vector<1x33x8xf32> to vector<33x8xf32>
    %179 = vector.broadcast %176 : f32 to vector<33x8xf32>
    %180 = arith.mulf %179, %178 : vector<33x8xf32>
    %181 = arith.addf %157, %180 : vector<33x8xf32>
    %c15_108 = arith.constant 15 : index
    %182 = memref.load %arg0[%c15_108] : memref<16xf32, #tpu.memory_space<smem>>
    %c15_109 = arith.constant 15 : index
    %c0_110 = arith.constant 0 : index
    %c0_111 = arith.constant 0 : index
    %183 = vector.load %arg3[%c15_109, %c0_110, %c0_111] : memref<17x33x8xf32, #tpu.memory_space<vmem>>, vector<1x33x8xf32>
    %184 = vector.shape_cast %183 : vector<1x33x8xf32> to vector<33x8xf32>
    %185 = vector.broadcast %182 : f32 to vector<33x8xf32>
    %186 = arith.mulf %185, %184 : vector<33x8xf32>
    %187 = arith.addf %163, %186 : vector<33x8xf32>
    %c16 = arith.constant 16 : index
    %c0_112 = arith.constant 0 : index
    %c0_113 = arith.constant 0 : index
    %188 = vector.load %arg2[%c16, %c0_112, %c0_113] : memref<17x33x32xf32, #tpu.memory_space<vmem>>, vector<1x33x32xf32>
    %189 = vector.shape_cast %188 : vector<1x33x32xf32> to vector<33x32xf32>
    %190 = arith.addf %169, %175 : vector<33x32xf32>
    %191 = arith.addf %189, %190 : vector<33x32xf32>
    %c16_114 = arith.constant 16 : index
    %c0_115 = arith.constant 0 : index
    %c0_116 = arith.constant 0 : index
    %192 = vector.load %arg3[%c16_114, %c0_115, %c0_116] : memref<17x33x8xf32, #tpu.memory_space<vmem>>, vector<1x33x8xf32>
    %193 = vector.shape_cast %192 : vector<1x33x8xf32> to vector<33x8xf32>
    %194 = arith.addf %181, %187 : vector<33x8xf32>
    %195 = arith.addf %193, %194 : vector<33x8xf32>
    %c0_117 = arith.constant 0 : index
    %c0_118 = arith.constant 0 : index
    %196 = vector.load %arg1[%c0_117, %c0_118] : memref<2x32xf32, #tpu.memory_space<vmem>>, vector<2x32xf32>
    %197 = vector.extract_strided_slice %191 {offsets = [0, 0], sizes = [32, 32], strides = [1, 1]} : vector<33x32xf32> to vector<32x32xf32>
    %cst = arith.constant dense<0.000000e+00> : vector<2x32xf32>
    %198 = tpu.matmul %196, %197, %cst {dimension_numbers = #tpu.dot_dimension_numbers<[1], [0], [0], [1], [0, 0, 1, 1], [], []>} : vector<2x32xf32>, vector<32x32xf32>, vector<2x32xf32> -> vector<2x32xf32>
    %199 = vector.extract_strided_slice %191 {offsets = [32, 0], sizes = [1, 32], strides = [1, 1]} : vector<33x32xf32> to vector<1x32xf32>
    %200 = vector.broadcast %199 : vector<1x32xf32> to vector<2x32xf32>
    %201 = arith.addf %198, %200 : vector<2x32xf32>
    %cst_119 = arith.constant 0.000000e+00 : f32
    %202 = vector.broadcast %cst_119 : f32 to vector<2x32xf32>
    %203 = arith.maximumf %201, %202 : vector<2x32xf32>
    %204 = vector.extract_strided_slice %195 {offsets = [0, 0], sizes = [32, 8], strides = [1, 1]} : vector<33x8xf32> to vector<32x8xf32>
    %cst_120 = arith.constant dense<0.000000e+00> : vector<2x8xf32>
    %205 = tpu.matmul %203, %204, %cst_120 {dimension_numbers = #tpu.dot_dimension_numbers<[1], [0], [0], [1], [0, 0, 1, 1], [], []>} : vector<2x32xf32>, vector<32x8xf32>, vector<2x8xf32> -> vector<2x8xf32>
    %206 = vector.extract_strided_slice %195 {offsets = [32, 0], sizes = [1, 8], strides = [1, 1]} : vector<33x8xf32> to vector<1x8xf32>
    %207 = vector.broadcast %206 : vector<1x8xf32> to vector<2x8xf32>
    %208 = arith.addf %205, %207 : vector<2x8xf32>
    %c0_121 = arith.constant 0 : index
    %c0_122 = arith.constant 0 : index
    %209 = vector.load %arg4[%c0_121, %c0_122] : memref<2x8xf32, #tpu.memory_space<vmem>>, vector<2x8xf32>
    tpu.vector_store %arg4[%c0_121, %c0_122], %208 {strides = array<i32>} : memref<2x8xf32, #tpu.memory_space<vmem>>, vector<2x8xf32>,
    return
  }
}

</mosaic_0001>

<bundles_post_ra>
// kernel: forward.1
= control target key start
LH: loop header
LB: loop body
LE: loop exit
PB: predicated region body
PF: predicated region fallthrough
CT: control target
= control target key end

     0   :  { %9 = vsyncpa [#allocation5], 0  ;;  %s1315_s0 = inlined_call_operand.vmem [shape: f32[16], index: 0, kind: input, shape index: {}]   ;;  %s1316_s1 = inlined_call_operand.hbm [shape: f32[2,32], index: 1, kind: input, shape index: {}]   ;;  %s1317_s2 = inlined_call_operand.hbm [shape: f32[17,33,32], index: 2, kind: input, shape index: {}]   ;;  %s1318_s3 = inlined_call_operand.hbm [shape: f32[17,33,8], index: 3, kind: input, shape index: {}]   ;;  %s1319_s4 = inlined_call_operand.hbm [shape: f32[2,8], index: 4, kind: output, shape index: {}]  }
   0x1   :  { %10 = vsyncpa [#allocation3], 0 }
   0x2   :  { %11 = vsyncpa [#allocation8], 0 }
   0x3   :  { %12 = vsyncpa [#allocation4], 0  ;;  %s979_s15 = smov [#allocation7]   ;;  %s19_s19 = sshll.u32 %s1315_s0, 4  ;;  %s20_s19 = int_to_ptr.vmem [resolvable:$true] %s19_s19 }
   0x4   :  { %s38_s16 = sshll.u32 %s979_s15, 4  ;;  %s871_s22 = scalar_lea.hbm %s1317_s2, 10880  ;;  %s39_s16 = int_to_ptr.vmem [resolvable:$true] %s38_s16 }
   0x5   :  { %p872_p0 = scmp.ne.s32.totalorder %s1317_s2, %s871_s22  ;;  %p875_p1 = scmp.lt.u32.totalorder %s871_s22, %s1317_s2 }
   0x7   :  { %p877_p2 = pnand %p875_p1, %p872_p0 }
   0x9   :  { %880 = shalt.err (!%p877_p2)
}
   0xa   :  { %s881_s27 = scalar_lea.vmem %s39_s16, 10880  ;;  %p886_p4 = scmp.lt.s32.totalorder %s39_s16, %s39_s16 }
   0xb   :  { %p882_p3 = scmp.ne.s32.totalorder %s39_s16, %s881_s27  ;;  %p887_p5 = scmp.lt.s32.totalorder %s881_s27, %s881_s27 }
   0xd   :  { %p888_p6 = por %p887_p5, %p886_p4 }
   0xf   :  { %p889_p7 = pnand %p888_p6, %p882_p3 }
  0x11   :  { %892 = shalt.err (!%p889_p7)
}
  0x12   :  { %s980_s0 = smov 128   ;;  %s981_s28 = smov 8  }
  0x13   :  { %44 = dma.hbm_to_vmem [thread:$0]  %s1317_s2, 10880, %s39_s16, [#allocation8], %s980_s0, %s980_s0, %s981_s28  }
  0x14   :  { %s893_s5 = scalar_lea.vmem %s20_s19, 16  ;;  %p898_p9 = scmp.lt.s32.totalorder %s20_s19, %s20_s19 }
  0x15   :  { %p894_p8 = scmp.ne.s32.totalorder %s20_s19, %s893_s5  ;;  %p899_p10 = scmp.lt.s32.totalorder %s893_s5, %s893_s5 }
  0x17   :  { %p900_p11 = por %p899_p10, %p898_p9 }
  0x19   :  { %p901_p12 = pnand %p900_p11, %p894_p8 }
  0x1b   :  { %904 = shalt.err (!%p901_p12)
}
  0x1c   :  { %s982_s6 = smov [#allocation2]   ;;  %s983_s7 = smov [#allocation6]  }
  0x1d   :  { %22 = dma.vmem_to_smem %s20_s19, 16, %s982_s6, [#allocation5]  }
  0x1e   :  { %s29_s8 = sshll.u32 %s983_s7, 4  ;;  %s984_s9 = smov [#allocation9]   ;;  %s30_s8 = int_to_ptr.vmem [resolvable:$true] %s29_s8 }
  0x1f   :  { %s50_s10 = sshll.u32 %s984_s9, 4  ;;  %s905_s2 = scalar_lea.hbm %s1316_s1, 32  ;;  %s1032_s10 = int_to_ptr.vmem [resolvable:$true] %s50_s10 }
  0x20   :  { %p906_p13 = scmp.ne.s32.totalorder %s1316_s1, %s905_s2  ;;  %p909_p0 = scmp.lt.u32.totalorder %s905_s2, %s1316_s1 }
  0x22   :  { %p911_p1 = pnand %p909_p0, %p906_p13 }
  0x24   :  { %914 = shalt.err (!%p911_p1)
}
  0x25   :  { %s915_s17 = scalar_lea.vmem %s30_s8, 32  ;;  %p920_p3 = scmp.lt.s32.totalorder %s30_s8, %s30_s8 }
  0x26   :  { %p916_p2 = scmp.ne.s32.totalorder %s30_s8, %s915_s17  ;;  %p921_p4 = scmp.lt.s32.totalorder %s915_s17, %s915_s17 }
  0x28   :  { %p922_p5 = por %p921_p4, %p920_p3 }
  0x2a   :  { %p923_p6 = pnand %p922_p5, %p916_p2 }
  0x2c   :  { %926 = shalt.err (!%p923_p6)
}
  0x2d   :  { %32 = dma.hbm_to_vmem [thread:$0]  %s1316_s1, 32, %s30_s8, [#allocation3]  }
  0x2e   :  { %s927_s22 = scalar_lea.hbm %s1318_s3, 10880 }
  0x2f   :  { %p928_p7 = scmp.ne.s32.totalorder %s1318_s3, %s927_s22  ;;  %p931_p8 = scmp.lt.u32.totalorder %s927_s22, %s1318_s3 }
  0x31   :  { %p933_p9 = pnand %p931_p8, %p928_p7 }
  0x33   :  { %936 = shalt.err (!%p933_p9)
}
  0x34   :  { %s937_s27 = scalar_lea.vmem %s1032_s10, 10880  ;;  %p942_p11 = scmp.lt.s32.totalorder %s1032_s10, %s1032_s10 }
  0x35   :  { %p938_p10 = scmp.ne.s32.totalorder %s1032_s10, %s937_s27  ;;  %p943_p12 = scmp.lt.s32.totalorder %s937_s27, %s937_s27 }
  0x37   :  { %p944_p13 = por %p943_p12, %p942_p11 }
  0x39   :  { %p945_p0 = pnand %p944_p13, %p938_p10 }
  0x3b   :  { %948 = shalt.err (!%p945_p0)
}
  0x3c   :  { %56 = dma.hbm_to_vmem [thread:$0]  %s1318_s3, 10880, %s1032_s10, [#allocation8], %s980_s0, %s980_s0, %s981_s28  }
  0x3d   :  { %971 = dma.done.wait [#allocation5], 16  }
  0x3e   :  { %972 = vsyncadd [#allocation5], 4294967280 }
  0x3f   :  { %973 = dma.done.wait [#allocation3], 32  }
  0x40   :  { %974 = vsyncadd [#allocation3], 4294967264 }
  0x41   :  { %975 = dma.done.wait [#allocation8], 21760  }
  0x42   :  { %976 = vsyncadd [#allocation8], 4294945536 }
  0x43   :  { %69 = sfence }
  0x44   :  { %s70_s30 = sld [smem:[#allocation2]]  ;;  %v985_v0 = vmov 0.0|0.0   ;;  %s801_s6 = sld [smem:[#allocation2 + $0x1]]  ;;  %v71_v1 = vld [vmem:[#allocation7] sm:$0xff]  ;;  %v72_v2 = vld [vmem:[#allocation7 + $0x8] sm:$0xff]  ;;  %v119_v6 = vld [vmem:[#allocation7 + $0x30] sm:$0xff] }
  0x45   :  { %849 = vmatprep.subr.bf16.mxu0 %v985_v0  ;;  %s800_s5 = sld [smem:[#allocation2 + $0x8]]  ;;  %855 = vmatprep.subr.bf16.mxu1 %v985_v0  ;;  %s1068_s7 = sld [smem:[#allocation2 + $0x9]]  ;;  %v84_v3 = vld [vmem:[#allocation7 + $0x140] sm:$0xff]  ;;  %v85_v4 = vld [vmem:[#allocation7 + $0x148] sm:$0xff]  ;;  %vm986_vm0 = vmmov 0   ;;  %v987_v7 = vmov 0.0  }
  0x46   :  { %s1070_s8 = sld [smem:[#allocation2 + $0x2]]  ;;  %s1074_s0 = sld [smem:[#allocation2 + $0x3]]  ;;  %v118_v5 = vld [vmem:[#allocation7 + $0x28] sm:$0xff]  ;;  %835 = vmatprep.mubr.msk.f32.mxu0 %vm986_vm0, %v987_v7  ;;  %846 = vmatprep.mubr.msk.f32.mxu1 %vm986_vm0, %v987_v7  ;;  %v137_v14 = vld [vmem:[#allocation7 + $0x170] sm:$0xff]  ;;  %v187_v20 = vld [vmem:[#allocation7 + $0x58] sm:$0xff]  ;;  %vm629_vm1 = vcmask 261120  }
  0x47   :  { %s1072_s3 = sld [smem:[#allocation2 + $0xa]]  ;;  %s1076_s28 = sld [smem:[#allocation2 + $0xb]]  ;;  %v136_v9 = vld [vmem:[#allocation7 + $0x168] sm:$0xff]  ;;  %v186_v15 = vld [vmem:[#allocation7 + $0x50] sm:$0xff]  ;;  %v205_v22 = vld [vmem:[#allocation7 + $0x198] sm:$0xff]  ;;  %vm781_vm2 = vcmask 58368  }
  0x48   :  { %s1086_s9 = sld [smem:[#allocation2 + $0x4]]  ;;  %v204_v21 = vld [vmem:[#allocation7 + $0x190] sm:$0xff]  ;;  %s1103_s11 = sld [smem:[#allocation2 + $0x5]]  ;;  %v254_v30 = vld [vmem:[#allocation7 + $0x78] sm:$0xff]  ;;  %v255_v31 = vld [vmem:[#allocation7 + $0x80] sm:$0xff] }
  0x49   :  { %s1088_s10 = sld [smem:[#allocation2 + $0xc]]  ;;  %s1105_s12 = sld [smem:[#allocation2 + $0xd]]  ;;  %v272_v36 = vld [vmem:[#allocation7 + $0x1b8] sm:$0xff]  ;;  %v273_v37 = vld [vmem:[#allocation7 + $0x1c0] sm:$0xff]  ;;  %v323_v47 = vld [vmem:[#allocation7 + $0xa8] sm:$0xff] }
  0x4a   :  { %v1078_v8 = vstv %s70_s30  ;;  %v1084_v13 = vstv %s801_s6  ;;  %s1119_s2 = sld [smem:[#allocation2 + $0x6]]  ;;  %v322_v46 = vld [vmem:[#allocation7 + $0xa0] sm:$0xff]  ;;  %v341_v53 = vld [vmem:[#allocation7 + $0x1e8] sm:$0xff]  ;;  %s1127_s14 = sld [smem:[#allocation2 + $0x7]]  ;;  %v391_v59 = vld [vmem:[#allocation7 + $0xd0] sm:$0xff] }
  0x4b   :  { %v77_v10 = vmul.f32 %v1078_v8, %v71_v1  ;;  %v78_v11 = vmul.f32 %v1078_v8, %v72_v2  ;;  %v1082_v12 = vstv %s800_s5  ;;  %v124_v18 = vmul.f32 %v1084_v13, %v118_v5  ;;  %s1121_s13 = sld [smem:[#allocation2 + $0xe]]  ;;  %v340_v52 = vld [vmem:[#allocation7 + $0x1e0] sm:$0xff]  ;;  %s1129_s15 = sld [smem:[#allocation2 + $0xf]]  ;;  %v390_v58 = vld [vmem:[#allocation7 + $0xc8] sm:$0xff]  ;;  %v409_v2 = vld [vmem:[#allocation7 + $0x210] sm:$0xff] }
  0x4c   :  { %v90_v16 = vmul.f32 %v1082_v12, %v84_v3  ;;  %v91_v17 = vmul.f32 %v1082_v12, %v85_v4  ;;  %v125_v19 = vmul.f32 %v1084_v13, %v119_v6  ;;  %v1095_v23 = vstv %s1068_s7  ;;  %v408_v1 = vld [vmem:[#allocation7 + $0x208] sm:$0xff]  ;;  %s988_s16 = smov [#allocation10]  }
  0x4d   :  { %v1098_v24 = vstv %s1070_s8  ;;  %v1101_v25 = vstv %s1072_s3  ;;  %v129_v26 = vadd.f32 %v124_v18, %v77_v10  ;;  %v142_v28 = vmul.f32 %v1095_v23, %v136_v9  ;;  %s789_s17 = sshll.u32 %s988_s16, 4  ;;  %s790_s17 = int_to_ptr.vmem [resolvable:$true] %s789_s17 }
  0x4e   :  { %v130_v27 = vadd.f32 %v125_v19, %v78_v11  ;;  %v143_v29 = vmul.f32 %v1095_v23, %v137_v14  ;;  %v192_v32 = vmul.f32 %v1098_v24, %v186_v15  ;;  %v193_v33 = vmul.f32 %v1098_v24, %v187_v20  ;;  %v458_v14 = vld [vmem:[#allocation7 + $0xf0] sm:$0xff]  ;;  %v459_v15 = vld [vmem:[#allocation7 + $0xf8] sm:$0xff]  ;;  %s949_s18 = scalar_lea.vmem %s790_s17, 32  ;;  %p954_p2 = scmp.lt.s32.totalorder %s790_s17, %s790_s17 }
  0x4f   :  { %v210_v34 = vmul.f32 %v1101_v25, %v204_v21  ;;  %v211_v35 = vmul.f32 %v1101_v25, %v205_v22  ;;  %v147_v38 = vadd.f32 %v142_v28, %v90_v16  ;;  %v1114_v40 = vstv %s1074_s0  ;;  %v476_v20 = vld [vmem:[#allocation7 + $0x230] sm:$0xff]  ;;  %v477_v21 = vld [vmem:[#allocation7 + $0x238] sm:$0xff]  ;;  %p950_p1 = scmp.ne.s32.totalorder %s790_s17, %s949_s18  ;;  %p955_p3 = scmp.lt.s32.totalorder %s949_s18, %s949_s18 }
  0x50   :  { %v148_v39 = vadd.f32 %v143_v29, %v91_v17  ;;  %v1117_v41 = vstv %s1076_s28  ;;  %v197_v42 = vadd.f32 %v192_v32, %v129_v26  ;;  %v198_v43 = vadd.f32 %v193_v33, %v130_v27  ;;  %v526_v29 = vld [vmem:[#allocation7 + $0x118] sm:$0xff] }
  0x51   :  { %v260_v44 = vmul.f32 %v1114_v40, %v254_v30  ;;  %v261_v45 = vmul.f32 %v1114_v40, %v255_v31  ;;  %v215_v48 = vadd.f32 %v210_v34, %v147_v38  ;;  %v278_v50 = vmul.f32 %v1117_v41, %v272_v36  ;;  %v527_v30 = vld [vmem:[#allocation7 + $0x120] sm:$0xff]  ;;  %p956_p4 = por %p955_p3, %p954_p2 }
  0x52   :  { %v216_v49 = vadd.f32 %v211_v35, %v148_v39  ;;  %v279_v51 = vmul.f32 %v1117_v41, %v273_v37  ;;  %v1132_v56 = vstv %s1086_s9  ;;  %v1135_v57 = vstv %s1088_s10  ;;  %v544_v35 = vld [vmem:[#allocation7 + $0x258] sm:$0xff]  ;;  %v545_v36 = vld [vmem:[#allocation7 + $0x260] sm:$0xff] }
  0x53   :  { %v265_v54 = vadd.f32 %v260_v44, %v197_v42  ;;  %v266_v55 = vadd.f32 %v261_v45, %v198_v43  ;;  %v283_v60 = vadd.f32 %v278_v50, %v215_v48  ;;  %v328_v62 = vmul.f32 %v1132_v56, %v322_v46  ;;  %v73_v43 = vld [vmem:[#allocation7 + $0x10] sm:$0xff]  ;;  %v74_v44 = vld [vmem:[#allocation7 + $0x18] sm:$0xff]  ;;  %p957_p5 = pnand %p956_p4, %p950_p1 }
  0x54   :  { %v284_v61 = vadd.f32 %v279_v51, %v216_v49  ;;  %v329_v63 = vmul.f32 %v1132_v56, %v323_v47  ;;  %v346_v3 = vmul.f32 %v1135_v57, %v340_v52  ;;  %v347_v4 = vmul.f32 %v1135_v57, %v341_v53  ;;  %v86_v49 = vld [vmem:[#allocation7 + $0x150] sm:$0xff]  ;;  %v87_v50 = vld [vmem:[#allocation7 + $0x158] sm:$0xff] }
  0x55   :  { %v1142_v5 = vstv %s1103_s11  ;;  %v1145_v6 = vstv %s1105_s12  ;;  %v333_v7 = vadd.f32 %v328_v62, %v265_v54  ;;  %v1152_v27 = vstv %s1119_s2  ;;  %v120_v51 = vld [vmem:[#allocation7 + $0x38] sm:$0xff] }
  0x56   :  { %v334_v9 = vadd.f32 %v329_v63, %v266_v55  ;;  %v396_v10 = vmul.f32 %v1142_v5, %v390_v58  ;;  %v397_v11 = vmul.f32 %v1142_v5, %v391_v59  ;;  %v351_v16 = vadd.f32 %v346_v3, %v283_v60  ;;  %v121_v58 = vld [vmem:[#allocation7 + $0x40] sm:$0xff]  ;;  %v138_v59 = vld [vmem:[#allocation7 + $0x178] sm:$0xff]  ;;  %v189_v3 = vld [vmem:[#allocation7 + $0x68] sm:$0xff] }
  0x57   :  { %v352_v17 = vadd.f32 %v347_v4, %v284_v61  ;;  %v414_v18 = vmul.f32 %v1145_v6, %v408_v1  ;;  %v415_v19 = vmul.f32 %v1145_v6, %v409_v2  ;;  %v1155_v28 = vstv %s1121_s13  ;;  %v139_v60 = vld [vmem:[#allocation7 + $0x180] sm:$0xff] }
  0x58   :  { %v401_v22 = vadd.f32 %v396_v10, %v333_v7  ;;  %v402_v26 = vadd.f32 %v397_v11, %v334_v9  ;;  %v464_v33 = vmul.f32 %v1152_v27, %v458_v14  ;;  %v465_v34 = vmul.f32 %v1152_v27, %v459_v15  ;;  %v188_v2 = vld [vmem:[#allocation7 + $0x60] sm:$0xff]  ;;  %v594_v14 = vld [vmem:[#allocation7 + $0x288] sm:$0xff] }
  0x59   :  { %v419_v31 = vadd.f32 %v414_v18, %v351_v16  ;;  %v420_v32 = vadd.f32 %v415_v19, %v352_v17  ;;  %v482_v37 = vmul.f32 %v1155_v28, %v476_v20  ;;  %v483_v38 = vmul.f32 %v1155_v28, %v477_v21  ;;  %v593_v9 = vld [vmem:[#allocation7 + $0x280] sm:$0xff]  ;;  %v207_v20 = vld [vmem:[#allocation7 + $0x1a8] sm:$0xff] }
  0x5a   :  { %v1162_v39 = vstv %s1127_s14  ;;  %v1165_v42 = vstv %s1129_s15  ;;  %v469_v45 = vadd.f32 %v464_v33, %v401_v22  ;;  %v470_v46 = vadd.f32 %v465_v34, %v402_v26  ;;  %v206_v19 = vld [vmem:[#allocation7 + $0x1a0] sm:$0xff] }
  0x5b   :  { %v532_v47 = vmul.f32 %v1162_v39, %v526_v29  ;;  %v533_v48 = vmul.f32 %v1162_v39, %v527_v30  ;;  %v487_v52 = vadd.f32 %v482_v37, %v419_v31  ;;  %v488_v53 = vadd.f32 %v483_v38, %v420_v32  ;;  %v256_v30 = vld [vmem:[#allocation7 + $0x88] sm:$0xff]  ;;  %v257_v31 = vld [vmem:[#allocation7 + $0x90] sm:$0xff] }
  0x5c   :  { %v550_v54 = vmul.f32 %v1165_v42, %v544_v35  ;;  %v551_v55 = vmul.f32 %v1165_v42, %v545_v36  ;;  %v79_v63 = vmul.f32 %v1078_v8, %v73_v43  ;;  %v80_v1 = vmul.f32 %v1078_v8, %v74_v44  ;;  %v274_v36 = vld [vmem:[#allocation7 + $0x1c8] sm:$0xff] }
  0x5d   :  { %v537_v61 = vadd.f32 %v532_v47, %v469_v45  ;;  %v538_v62 = vadd.f32 %v533_v48, %v470_v46  ;;  %v92_v10 = vmul.f32 %v1082_v12, %v86_v49  ;;  %v93_v11 = vmul.f32 %v1082_v12, %v87_v50  ;;  %v275_v45 = vld [vmem:[#allocation7 + $0x1d0] sm:$0xff] }
  0x5e   :  { %v555_v4 = vadd.f32 %v550_v54, %v487_v52  ;;  %v556_v7 = vadd.f32 %v551_v55, %v488_v53  ;;  %v126_v15 = vmul.f32 %v1084_v13, %v120_v51  ;;  %v127_v16 = vmul.f32 %v1084_v13, %v121_v58  ;;  %v324_v46 = vld [vmem:[#allocation7 + $0xb0] sm:$0xff]  ;;  %v325_v51 = vld [vmem:[#allocation7 + $0xb8] sm:$0xff] }
  0x5f   :  { %v144_v17 = vmul.f32 %v1095_v23, %v138_v59  ;;  %v145_v18 = vmul.f32 %v1095_v23, %v139_v60  ;;  %v194_v26 = vmul.f32 %v1098_v24, %v188_v2  ;;  %v195_v29 = vmul.f32 %v1098_v24, %v189_v3  ;;  %v342_v52 = vld [vmem:[#allocation7 + $0x1f0] sm:$0xff]  ;;  %v343_v53 = vld [vmem:[#allocation7 + $0x1f8] sm:$0xff] }
  0x60   :  { %v598_v21 = vadd.f32 %v555_v4, %v537_v61  ;;  %v599_v22 = vadd.f32 %v556_v7, %v538_v62  ;;  %v131_v32 = vadd.f32 %v126_v15, %v79_v63  ;;  %v132_v33 = vadd.f32 %v127_v16, %v80_v1  ;;  %v392_v60 = vld [vmem:[#allocation7 + $0xd8] sm:$0xff]  ;;  %v393_v61 = vld [vmem:[#allocation7 + $0xe0] sm:$0xff]  ;;  %v461_v15 = vld [vmem:[#allocation7 + $0x108] sm:$0xff] }
  0x61   :  { %v149_v34 = vadd.f32 %v144_v17, %v92_v10  ;;  %v150_v35 = vadd.f32 %v145_v18, %v93_v11  ;;  %v212_v43 = vmul.f32 %v1101_v25, %v206_v19  ;;  %v213_v44 = vmul.f32 %v1101_v25, %v207_v20  ;;  %v410_v3 = vld [vmem:[#allocation7 + $0x218] sm:$0xff]  ;;  %v411_v4 = vld [vmem:[#allocation7 + $0x220] sm:$0xff] }
  0x62   :  { %v603_v37 = vadd.f32 %v598_v21, %v593_v9  ;;  %v604_v38 = vadd.f32 %v599_v22, %v594_v14  ;;  %v199_v47 = vadd.f32 %v194_v26, %v131_v32  ;;  %v200_v48 = vadd.f32 %v195_v29, %v132_v33  ;;  %v460_v14 = vld [vmem:[#allocation7 + $0x100] sm:$0xff]  ;;  %v479_v21 = vld [vmem:[#allocation7 + $0x248] sm:$0xff]  ;;  %v529_v32 = vld [vmem:[#allocation7 + $0x130] sm:$0xff] }
  0x63   :  { %v262_v49 = vmul.f32 %v1114_v40, %v256_v30  ;;  %v263_v50 = vmul.f32 %v1114_v40, %v257_v31  ;;  %v217_v55 = vadd.f32 %v212_v43, %v149_v34  ;;  %v218_v58 = vadd.f32 %v213_v44, %v150_v35  ;;  %v478_v20 = vld [vmem:[#allocation7 + $0x240] sm:$0xff]  ;;  %v528_v31 = vld [vmem:[#allocation7 + $0x128] sm:$0xff] }
  0x64   :  { %v850_v54 = vpack.c.bf16 %v604_v38, %v603_v37  ;;  %v280_v59 = vmul.f32 %v1117_v41, %v274_v36  ;;  %v281_v1 = vmul.f32 %v1117_v41, %v275_v45  ;;  %v330_v2 = vmul.f32 %v1132_v56, %v324_v46  ;;  %v546_v37 = vld [vmem:[#allocation7 + $0x268] sm:$0xff]  ;;  %v547_v38 = vld [vmem:[#allocation7 + $0x270] sm:$0xff] }
  0x65   :  { %v267_v62 = vadd.f32 %v262_v49, %v199_v47  ;;  %v268_v63 = vadd.f32 %v263_v50, %v200_v48  ;;  %v331_v9 = vmul.f32 %v1132_v56, %v325_v51  ;;  %v348_v10 = vmul.f32 %v1135_v57, %v342_v52  ;;  %v95_v47 = vld [vmem:[#allocation9] sm:$0xff]  ;;  %v96_v48 = vld [vmem:[#allocation9 + $0x8] sm:$0xff] }
  0x66   :  { %851 = vmatpush3.bf16.msra.mxu0 %v850_v54  ;;  %v285_v7 = vadd.f32 %v280_v59, %v217_v55  ;;  %v349_v11 = vmul.f32 %v1135_v57, %v343_v53  ;;  %v286_v16 = vadd.f32 %v281_v1, %v218_v58  ;;  %v398_v18 = vmul.f32 %v1142_v5, %v392_v60  ;;  %v106_v53 = vld [vmem:[#allocation9 + $0x140] sm:$0xff]  ;;  %v107_v54 = vld [vmem:[#allocation9 + $0x148] sm:$0xff] }
  0x67   :  { %852 = vmatprep.subr.bf16.mxu0 %v985_v0  ;;  %v335_v17 = vadd.f32 %v330_v2, %v267_v62  ;;  %v399_v19 = vmul.f32 %v1142_v5, %v393_v61  ;;  %v336_v22 = vadd.f32 %v331_v9, %v268_v63  ;;  %v416_v29 = vmul.f32 %v1145_v6, %v410_v3  ;;  %v153_v61 = vld [vmem:[#allocation9 + $0x28] sm:$0xff]  ;;  %v154_v62 = vld [vmem:[#allocation9 + $0x30] sm:$0xff] }
  0x68   :  { %v353_v26 = vadd.f32 %v348_v10, %v285_v7  ;;  %v417_v30 = vmul.f32 %v1145_v6, %v411_v4  ;;  %v354_v33 = vadd.f32 %v349_v11, %v286_v16  ;;  %v466_v35 = vmul.f32 %v1152_v27, %v460_v14  ;;  %v169_v63 = vld [vmem:[#allocation9 + $0x168] sm:$0xff]  ;;  %v170_v7 = vld [vmem:[#allocation9 + $0x170] sm:$0xff]  ;;  %v222_v10 = vld [vmem:[#allocation9 + $0x58] sm:$0xff] }
  0x69   :  { %v403_v34 = vadd.f32 %v398_v18, %v335_v17  ;;  %v467_v36 = vmul.f32 %v1152_v27, %v461_v15  ;;  %v404_v43 = vadd.f32 %v399_v19, %v336_v22  ;;  %v484_v45 = vmul.f32 %v1155_v28, %v478_v20  ;;  %v221_v9 = vld [vmem:[#allocation9 + $0x50] sm:$0xff]  ;;  %v595_v18 = vld [vmem:[#allocation7 + $0x290] sm:$0xff] }
  0x6a   :  { %v421_v44 = vadd.f32 %v416_v29, %v353_v26  ;;  %v485_v46 = vmul.f32 %v1155_v28, %v479_v21  ;;  %v422_v49 = vadd.f32 %v417_v30, %v354_v33  ;;  %v534_v51 = vmul.f32 %v1162_v39, %v528_v31  ;;  %v237_v22 = vld [vmem:[#allocation9 + $0x190] sm:$0xff]  ;;  %v238_v26 = vld [vmem:[#allocation9 + $0x198] sm:$0xff] }
  0x6b   :  { %v471_v50 = vadd.f32 %v466_v35, %v403_v34  ;;  %v535_v52 = vmul.f32 %v1162_v39, %v529_v32  ;;  %v472_v55 = vadd.f32 %v467_v36, %v404_v43  ;;  %v552_v59 = vmul.f32 %v1165_v42, %v546_v37  ;;  %v596_v29 = vld [vmem:[#allocation7 + $0x298] sm:$0xff]  ;;  %v289_v34 = vld [vmem:[#allocation9 + $0x78] sm:$0xff]  ;;  %v290_v43 = vld [vmem:[#allocation9 + $0x80] sm:$0xff] }
  0x6c   :  { %v489_v58 = vadd.f32 %v484_v45, %v421_v44  ;;  %v553_v60 = vmul.f32 %v1165_v42, %v547_v38  ;;  %v490_v1 = vadd.f32 %v485_v46, %v422_v49  ;;  %v100_v3 = vmul.f32 %v95_v47, %v1078_v8  ;;  %v305_v44 = vld [vmem:[#allocation9 + $0x1b8] sm:$0xff]  ;;  %v306_v49 = vld [vmem:[#allocation9 + $0x1c0] sm:$0xff] }
  0x6d   :  { %v539_v2 = vadd.f32 %v534_v51, %v471_v50  ;;  %v101_v4 = vmul.f32 %v96_v48, %v1078_v8  ;;  %v540_v11 = vadd.f32 %v535_v52, %v472_v55  ;;  %v111_v15 = vmul.f32 %v106_v53, %v1082_v12  ;;  %v357_v50 = vld [vmem:[#allocation9 + $0xa0] sm:$0xff]  ;;  %v358_v55 = vld [vmem:[#allocation9 + $0xa8] sm:$0xff] }
  0x6e   :  { %v557_v14 = vadd.f32 %v552_v59, %v489_v58  ;;  %v112_v16 = vmul.f32 %v107_v54, %v1082_v12  ;;  %v558_v17 = vadd.f32 %v553_v60, %v490_v1  ;;  %v158_v19 = vmul.f32 %v153_v61, %v1084_v13  ;;  %v373_v58 = vld [vmem:[#allocation9 + $0x1e0] sm:$0xff]  ;;  %v425_v1 = vld [vmem:[#allocation9 + $0xc8] sm:$0xff] }
  0x6f   :  { %v159_v20 = vmul.f32 %v154_v62, %v1084_v13  ;;  %v174_v21 = vmul.f32 %v169_v63, %v1095_v23  ;;  %v175_v31 = vmul.f32 %v170_v7, %v1095_v23  ;;  %v226_v32 = vmul.f32 %v221_v9, %v1098_v24  ;;  %v374_v63 = vld [vmem:[#allocation9 + $0x1e8] sm:$0xff]  ;;  %v426_v9 = vld [vmem:[#allocation9 + $0xd0] sm:$0xff] }
  0x70   :  { %v600_v30 = vadd.f32 %v557_v14, %v539_v2  ;;  %v227_v33 = vmul.f32 %v222_v10, %v1098_v24  ;;  %v601_v35 = vadd.f32 %v558_v17, %v540_v11  ;;  %v163_v36 = vadd.f32 %v158_v19, %v100_v3  ;;  %v441_v10 = vld [vmem:[#allocation9 + $0x208] sm:$0xff]  ;;  %v442_v17 = vld [vmem:[#allocation9 + $0x210] sm:$0xff] }
  0x71   :  { %v164_v37 = vadd.f32 %v159_v20, %v101_v4  ;;  %v179_v38 = vadd.f32 %v174_v21, %v111_v15  ;;  %v180_v46 = vadd.f32 %v175_v31, %v112_v16  ;;  %v242_v47 = vmul.f32 %v237_v22, %v1101_v25  ;;  %v624_v19 = vld [vmem:[#allocation6] sm:$0x3] }
  0x72   :  { %v605_v45 = vadd.f32 %v600_v30, %v595_v18  ;;  %v243_v48 = vmul.f32 %v238_v26, %v1101_v25  ;;  %v606_v51 = vadd.f32 %v601_v35, %v596_v29  ;;  %v231_v52 = vadd.f32 %v226_v32, %v163_v36  ;;  %v493_v18 = vld [vmem:[#allocation9 + $0xf0] sm:$0xff]  ;;  %v494_v29 = vld [vmem:[#allocation9 + $0xf8] sm:$0xff] }
  0x73   :  { %v232_v53 = vadd.f32 %v227_v33, %v164_v37  ;;  %v294_v54 = vmul.f32 %v289_v34, %v1114_v40  ;;  %v247_v59 = vadd.f32 %v242_v47, %v179_v38  ;;  %v295_v61 = vmul.f32 %v290_v43, %v1114_v40  ;;  %v509_v30 = vld [vmem:[#allocation9 + $0x230] sm:$0xff]  ;;  %v510_v35 = vld [vmem:[#allocation9 + $0x238] sm:$0xff] }
  0x74   :  { %v248_v60 = vadd.f32 %v243_v48, %v180_v46  ;;  %v310_v62 = vmul.f32 %v305_v44, %v1117_v41  ;;  %v853_v2 = vpack.c.bf16 %v606_v51, %v605_v45  ;;  %v311_v4 = vmul.f32 %v306_v49, %v1117_v41  ;;  %v561_v36 = vld [vmem:[#allocation9 + $0x118] sm:$0xff]  ;;  %v562_v45 = vld [vmem:[#allocation9 + $0x120] sm:$0xff] }
  0x75   :  { %v299_v3 = vadd.f32 %v294_v54, %v231_v52  ;;  %v362_v7 = vmul.f32 %v357_v50, %v1132_v56  ;;  %v300_v11 = vadd.f32 %v295_v61, %v232_v53  ;;  %v363_v15 = vmul.f32 %v358_v55, %v1132_v56  ;;  %v577_v46 = vld [vmem:[#allocation9 + $0x258] sm:$0xff]  ;;  %v578_v51 = vld [vmem:[#allocation9 + $0x260] sm:$0xff] }
  0x76   :  { %v315_v14 = vadd.f32 %v310_v62, %v247_v59  ;;  %v378_v16 = vmul.f32 %v373_v58, %v1135_v57  ;;  %854 = vmatpush3.bf16.msra.mxu0 %v853_v2  ;;  %v316_v20 = vadd.f32 %v311_v4, %v248_v60  ;;  %v379_v22 = vmul.f32 %v374_v63, %v1135_v57 }
  0x77   :  { %v367_v21 = vadd.f32 %v362_v7, %v299_v3  ;;  %v430_v26 = vmul.f32 %v425_v1, %v1142_v5  ;;  %v368_v31 = vadd.f32 %v363_v15, %v300_v11  ;;  %v431_v33 = vmul.f32 %v426_v9, %v1142_v5  ;;  %v609_v7 = vld [vmem:[#allocation9 + $0x280] sm:$0xff]  ;;  %v610_v9 = vld [vmem:[#allocation9 + $0x288] sm:$0xff] }
  0x78   :  { %v383_v32 = vadd.f32 %v378_v16, %v315_v14  ;;  %v446_v34 = vmul.f32 %v441_v10, %v1145_v6  ;;  %v384_v37 = vadd.f32 %v379_v22, %v316_v20  ;;  %v447_v43 = vmul.f32 %v442_v17, %v1145_v6  ;;  %v97_v17 = vld [vmem:[#allocation9 + $0x10] sm:$0xff]  ;;  %v109_v22 = vld [vmem:[#allocation9 + $0x158] sm:$0xff] }
  0x79   :  { %v435_v38 = vadd.f32 %v430_v26, %v367_v21  ;;  %v498_v44 = vmul.f32 %v493_v18, %v1152_v27  ;;  %836 = vmatmul.mubr.msk.f32.vlgmr.msra.gmra.mrb[0].mxu0 %vm629_vm1, %v624_v19  ;;  %v436_v47 = vadd.f32 %v431_v33, %v368_v31  ;;  %v499_v49 = vmul.f32 %v494_v29, %v1152_v27  ;;  %v98_v18 = vld [vmem:[#allocation9 + $0x18] sm:$0xff]  ;;  %v108_v19 = vld [vmem:[#allocation9 + $0x150] sm:$0xff] }
  0x7a   :  { %v451_v48 = vadd.f32 %v446_v34, %v383_v32  ;;  %v514_v50 = vmul.f32 %v509_v30, %v1155_v28  ;;  %v452_v52 = vadd.f32 %v447_v43, %v384_v37  ;;  %v515_v54 = vmul.f32 %v510_v35, %v1155_v28  ;;  %v155_v29 = vld [vmem:[#allocation9 + $0x38] sm:$0xff]  ;;  %v156_v30 = vld [vmem:[#allocation9 + $0x40] sm:$0xff] }
  0x7b   :  { %v503_v53 = vadd.f32 %v498_v44, %v435_v38  ;;  %v566_v55 = vmul.f32 %v561_v36, %v1162_v39  ;;  %v504_v58 = vadd.f32 %v499_v49, %v436_v47  ;;  %v567_v60 = vmul.f32 %v562_v45, %v1162_v39  ;;  %v171_v34 = vld [vmem:[#allocation9 + $0x178] sm:$0xff]  ;;  %v223_v35 = vld [vmem:[#allocation9 + $0x60] sm:$0xff]  ;;  %v224_v38 = vld [vmem:[#allocation9 + $0x68] sm:$0xff] }
  0x7c   :  { %v519_v59 = vadd.f32 %v514_v50, %v451_v48  ;;  %v582_v61 = vmul.f32 %v577_v46, %v1165_v42  ;;  %v520_v62 = vadd.f32 %v515_v54, %v452_v52  ;;  %v583_v1 = vmul.f32 %v578_v51, %v1165_v42  ;;  %v239_v44 = vld [vmem:[#allocation9 + $0x1a0] sm:$0xff]  ;;  %v240_v45 = vld [vmem:[#allocation9 + $0x1a8] sm:$0xff]  ;;  %v292_v51 = vld [vmem:[#allocation9 + $0x90] sm:$0xff] }
  0x7d   :  { %v571_v63 = vadd.f32 %v566_v55, %v503_v53  ;;  %v572_v2 = vadd.f32 %v567_v60, %v504_v58  ;;  %v102_v20 = vmul.f32 %v97_v17, %v1078_v8  ;;  %v103_v21 = vmul.f32 %v98_v18, %v1078_v8  ;;  %v291_v50 = vld [vmem:[#allocation9 + $0x88] sm:$0xff]  ;;  %v427_v18 = vld [vmem:[#allocation9 + $0xd8] sm:$0xff] }
  0x7e   :  { %v587_v3 = vadd.f32 %v582_v61, %v519_v59  ;;  %v588_v4 = vadd.f32 %v583_v1, %v520_v62  ;;  %v113_v26 = vmul.f32 %v108_v19, %v1082_v12  ;;  %v114_v31 = vmul.f32 %v109_v22, %v1082_v12  ;;  %v307_v52 = vld [vmem:[#allocation9 + $0x1c8] sm:$0xff]  ;;  %v308_v59 = vld [vmem:[#allocation9 + $0x1d0] sm:$0xff]  ;;  %v428_v19 = vld [vmem:[#allocation9 + $0xe0] sm:$0xff] }
  0x7f   :  { %v160_v32 = vmul.f32 %v155_v29, %v1084_v13  ;;  %v161_v33 = vmul.f32 %v156_v30, %v1084_v13  ;;  %v176_v36 = vmul.f32 %v171_v34, %v1095_v23  ;;  %v228_v43 = vmul.f32 %v223_v35, %v1098_v24  ;;  %v359_v1 = vld [vmem:[#allocation9 + $0xb0] sm:$0xff]  ;;  %v444_v30 = vld [vmem:[#allocation9 + $0x220] sm:$0xff]  ;;  %v496_v35 = vld [vmem:[#allocation9 + $0x108] sm:$0xff] }
  0x80   :  { %v614_v10 = vadd.f32 %v587_v3, %v571_v63  ;;  %v615_v11 = vadd.f32 %v588_v4, %v572_v2  ;;  %v229_v48 = vmul.f32 %v224_v38, %v1098_v24  ;;  %v244_v49 = vmul.f32 %v239_v44, %v1101_v25  ;;  %v360_v2 = vld [vmem:[#allocation9 + $0xb8] sm:$0xff]  ;;  %v375_v3 = vld [vmem:[#allocation9 + $0x1f0] sm:$0xff] }
  0x81   :  { %v165_v46 = vadd.f32 %v160_v32, %v102_v20  ;;  %v166_v47 = vadd.f32 %v161_v33, %v103_v21  ;;  %v181_v53 = vadd.f32 %v176_v36, %v113_v26  ;;  %v245_v55 = vmul.f32 %v240_v45, %v1101_v25  ;;  %v443_v20 = vld [vmem:[#allocation9 + $0x218] sm:$0xff]  ;;  %v511_v36 = vld [vmem:[#allocation9 + $0x240] sm:$0xff]  ;;  %v512_v45 = vld [vmem:[#allocation9 + $0x248] sm:$0xff] }
  0x82   :  { %v619_v14 = vadd.f32 %v614_v10, %v609_v7  ;;  %v620_v15 = vadd.f32 %v615_v11, %v610_v9  ;;  %v296_v58 = vmul.f32 %v291_v50, %v1114_v40  ;;  %v297_v62 = vmul.f32 %v292_v51, %v1114_v40  ;;  %v376_v11 = vld [vmem:[#allocation9 + $0x1f8] sm:$0xff]  ;;  %v563_v50 = vld [vmem:[#allocation9 + $0x128] sm:$0xff]  ;;  %v564_v51 = vld [vmem:[#allocation9 + $0x130] sm:$0xff] }
  0x83   :  { %v233_v60 = vadd.f32 %v228_v43, %v165_v46  ;;  %v234_v61 = vadd.f32 %v229_v48, %v166_v47  ;;  %v312_v63 = vmul.f32 %v307_v52, %v1117_v41  ;;  %v249_v4 = vadd.f32 %v244_v49, %v181_v53  ;;  %v579_v52 = vld [vmem:[#allocation9 + $0x268] sm:$0xff] }
  0x84   :  { %v856_v16 = vpack.c.bf16 %v620_v15, %v619_v14  ;;  %v313_v9 = vmul.f32 %v308_v59, %v1117_v41  ;;  %v364_v10 = vmul.f32 %v359_v1, %v1132_v56  ;;  %v380_v17 = vmul.f32 %v375_v3, %v1135_v57  ;;  %v580_v59 = vld [vmem:[#allocation9 + $0x270] sm:$0xff] }
  0x85   :  { %v301_v14 = vadd.f32 %v296_v58, %v233_v60  ;;  %v302_v15 = vadd.f32 %v297_v62, %v234_v61  ;;  %v317_v21 = vadd.f32 %v312_v63, %v249_v4  ;;  %v381_v26 = vmul.f32 %v376_v11, %v1135_v57  ;;  %v611_v11 = vld [vmem:[#allocation9 + $0x290] sm:$0xff] }
  0x86   :  { %857 = vmatpush3.bf16.msra.mxu1 %v856_v16  ;;  %v365_v16 = vmul.f32 %v360_v2, %v1132_v56  ;;  %v432_v29 = vmul.f32 %v427_v18, %v1142_v5  ;;  %v433_v33 = vmul.f32 %v428_v19, %v1142_v5  ;;  %v448_v34 = vmul.f32 %v443_v20, %v1145_v6  ;;  %v75_v20 = vld [vmem:[#allocation7 + $0x20] sm:$0x1] }
  0x87   :  { %858 = vmatprep.subr.bf16.mxu1 %v985_v0  ;;  %v172_v0 = vld [vmem:[#allocation9 + $0x180] sm:$0xff]  ;;  %v449_v43 = vmul.f32 %v444_v30, %v1145_v6  ;;  %v501_v48 = vmul.f32 %v496_v35, %v1152_v27  ;;  %v516_v49 = vmul.f32 %v511_v36, %v1155_v28  ;;  %v568_v58 = vmul.f32 %v563_v50, %v1162_v39 }
  0x88   :  { %v177_v37 = vmul.f32 %v172_v0, %v1095_v23  ;;  %v370_v32 = vadd.f32 %v365_v16, %v302_v15  ;;  %v495_v0 = vld [vmem:[#allocation9 + $0x100] sm:$0xff]  ;;  %v569_v62 = vmul.f32 %v564_v51, %v1162_v39  ;;  %v584_v63 = vmul.f32 %v579_v52, %v1165_v42 }
  0x89   :  { %v500_v44 = vmul.f32 %v495_v0, %v1152_v27  ;;  %v585_v3 = vmul.f32 %v580_v59, %v1165_v42 }
  0x8a   :  { %v182_v54 = vadd.f32 %v177_v37, %v114_v31  ;;  %v369_v31 = vadd.f32 %v364_v10, %v301_v14  ;;  %v385_v37 = vadd.f32 %v380_v17, %v317_v21  ;;  %v438_v47 = vadd.f32 %v433_v33, %v370_v32  ;;  %v612_v14 = vld [vmem:[#allocation9 + $0x298] sm:$0xff]  ;;  %v190_v33 = vld [vmem:[#allocation7 + $0x70] sm:$0x1] }
  0x8b   :  { %v88_v21 = vld [vmem:[#allocation7 + $0x160] sm:$0x1]  ;;  %v196_v36 = vmul.f32 %v1098_v24, %v190_v33 }
  0x8c   :  { %v250_v7 = vadd.f32 %v245_v55, %v182_v54  ;;  %v437_v46 = vadd.f32 %v432_v29, %v369_v31  ;;  %v453_v53 = vadd.f32 %v448_v34, %v385_v37  ;;  %v517_v55 = vmul.f32 %v512_v45, %v1155_v28  ;;  %v208_v34 = vld [vmem:[#allocation7 + $0x1b0] sm:$0x1] }
  0x8d   :  { %v506_v61 = vadd.f32 %v501_v48, %v438_v47  ;;  %v81_v29 = vmul.f32 %v1078_v8, %v75_v20  ;;  %v94_v30 = vmul.f32 %v1082_v12, %v88_v21  ;;  %v214_v37 = vmul.f32 %v1101_v25, %v208_v34  ;;  %v326_v48 = vld [vmem:[#allocation7 + $0xc0] sm:$0x1]  ;;  %v99_v34 = vld [vmem:[#allocation9 + $0x20] sm:$0x1] }
  0x8e   :  { %v318_v22 = vadd.f32 %v313_v9, %v250_v7  ;;  %v505_v60 = vadd.f32 %v500_v44, %v437_v46  ;;  %v521_v1 = vadd.f32 %v516_v49, %v453_v53  ;;  %v344_v49 = vld [vmem:[#allocation7 + $0x200] sm:$0x1]  ;;  %v332_v52 = vmul.f32 %v1132_v56, %v326_v48 }
  0x8f   :  { %v574_v7 = vadd.f32 %v569_v62, %v506_v61  ;;  %v350_v53 = vmul.f32 %v1135_v57, %v344_v49  ;;  %v462_v62 = vld [vmem:[#allocation7 + $0x110] sm:$0x1]  ;;  %v597_v21 = vld [vmem:[#allocation7 + $0x2a0] sm:$0x1] }
  0x90   :  { %v386_v38 = vadd.f32 %v381_v26, %v318_v22  ;;  %v573_v4 = vadd.f32 %v568_v58, %v505_v60  ;;  %v589_v9 = vadd.f32 %v584_v63, %v521_v1  ;;  %v122_v22 = vld [vmem:[#allocation7 + $0x48] sm:$0x1]  ;;  %v480_v63 = vld [vmem:[#allocation7 + $0x250] sm:$0x1] }
  0x91   :  { %v140_v26 = vld [vmem:[#allocation7 + $0x188] sm:$0x1]  ;;  %v128_v31 = vmul.f32 %v1084_v13, %v122_v22 }
  0x92   :  { %v454_v54 = vadd.f32 %v449_v43, %v386_v38  ;;  %v616_v15 = vadd.f32 %v589_v9, %v573_v4  ;;  %v146_v32 = vmul.f32 %v1095_v23, %v140_v26  ;;  %v258_v38 = vld [vmem:[#allocation7 + $0x98] sm:$0x1]  ;;  %v486_v4 = vmul.f32 %v1155_v28, %v480_v63 }
  0x93   :  { %v133_v0 = vadd.f32 %v128_v31, %v81_v29  ;;  %v276_v43 = vld [vmem:[#allocation7 + $0x1d8] sm:$0x1]  ;;  %v264_v46 = vmul.f32 %v1114_v40, %v258_v38 }
  0x94   :  { %v522_v2 = vadd.f32 %v517_v55, %v454_v54  ;;  %v621_v17 = vadd.f32 %v616_v15, %v611_v11  ;;  %v151_v35 = vadd.f32 %v146_v32, %v94_v30  ;;  %v282_v47 = vmul.f32 %v1117_v41, %v276_v43  ;;  %v394_v54 = vld [vmem:[#allocation7 + $0xe8] sm:$0x1]  ;;  %v548_v9 = vld [vmem:[#allocation7 + $0x278] sm:$0x1] }
  0x95   :  { %v201_v44 = vadd.f32 %v196_v36, %v133_v0  ;;  %v412_v55 = vld [vmem:[#allocation7 + $0x228] sm:$0x1]  ;;  %v400_v60 = vmul.f32 %v1142_v5, %v394_v54  ;;  %v554_v15 = vmul.f32 %v1165_v42, %v548_v9  ;;  %v173_v36 = vld [vmem:[#allocation9 + $0x188] sm:$0x1]  ;;  %v565_v9 = vld [vmem:[#allocation9 + $0x138] sm:$0x1] }
  0x96   :  { %v590_v10 = vadd.f32 %v585_v3, %v522_v2  ;;  %v219_v45 = vadd.f32 %v214_v37, %v151_v35  ;;  %v418_v61 = vmul.f32 %v1145_v6, %v412_v55  ;;  %v468_v3 = vmul.f32 %v1152_v27, %v462_v62  ;;  %v110_v0 = vld [vmem:[#allocation9 + $0x160] sm:$0x1]  ;;  %v157_v35 = vld [vmem:[#allocation9 + $0x48] sm:$0x1] }
  0x97   :  { %v269_v50 = vadd.f32 %v264_v46, %v201_v44  ;;  %v104_v37 = vmul.f32 %v99_v34, %v1078_v8  ;;  %v115_v38 = vmul.f32 %v110_v0, %v1082_v12  ;;  %v162_v43 = vmul.f32 %v157_v35, %v1084_v13  ;;  %v241_v46 = vld [vmem:[#allocation9 + $0x1b0] sm:$0x1]  ;;  %v361_v55 = vld [vmem:[#allocation9 + $0xc0] sm:$0x1] }
  0x98   :  { %v617_v16 = vadd.f32 %v590_v10, %v574_v7  ;;  %v287_v51 = vadd.f32 %v282_v47, %v219_v45  ;;  %v530_v7 = vld [vmem:[#allocation7 + $0x138] sm:$0x1]  ;;  %v178_v44 = vmul.f32 %v173_v36, %v1095_v23  ;;  %v377_v13 = vld [vmem:[#allocation9 + $0x200] sm:$0x1] }
  0x99   :  { %v337_v58 = vadd.f32 %v332_v52, %v269_v50  ;;  %v225_v45 = vld [vmem:[#allocation9 + $0x70] sm:$0x1]  ;;  %v167_v47 = vadd.f32 %v162_v43, %v104_v37  ;;  %v246_v50 = vmul.f32 %v241_v46, %v1101_v25  ;;  %v309_v52 = vld [vmem:[#allocation9 + $0x1d8] sm:$0x1] }
  0x9a   :  { %v622_v18 = vadd.f32 %v617_v16, %v612_v14  ;;  %v355_v59 = vadd.f32 %v350_v53, %v287_v51  ;;  %v536_v14 = vmul.f32 %v1162_v39, %v530_v7  ;;  %v183_v48 = vadd.f32 %v178_v44, %v115_v38  ;;  %v293_v51 = vld [vmem:[#allocation9 + $0x98] sm:$0x1] }
  0x9b   :  { %v405_v1 = vadd.f32 %v400_v60, %v337_v58  ;;  %v230_v49 = vmul.f32 %v225_v45, %v1098_v24  ;;  %v298_v8 = vmul.f32 %v293_v51, %v1114_v40  ;;  %v314_v12 = vmul.f32 %v309_v52, %v1117_v41  ;;  %v445_v24 = vld [vmem:[#allocation9 + $0x228] sm:$0x1]  ;;  %v513_v40 = vld [vmem:[#allocation9 + $0x250] sm:$0x1] }
  0x9c   :  { %v859_v19 = vpack.c.bf16 %v622_v18, %v621_v17  ;;  %v423_v2 = vadd.f32 %v418_v61, %v355_v59  ;;  %v625_v18 = vlaneseq  ;;  %v251_v54 = vadd.f32 %v246_v50, %v183_v48  ;;  %v429_v61 = vld [vmem:[#allocation9 + $0xe8] sm:$0x1] }
  0x9d   :  { %v473_v10 = vadd.f32 %v468_v3, %v405_v1  ;;  %v235_v53 = vadd.f32 %v230_v49, %v167_v47  ;;  %v366_v59 = vmul.f32 %v361_v55, %v1132_v56  ;;  %v382_v60 = vmul.f32 %v377_v13, %v1135_v57  ;;  %v581_v56 = vld [vmem:[#allocation9 + $0x278] sm:$0x1] }
  0x9e   :  { %860 = vmatpush3.bf16.msra.mxu1 %v859_v19  ;;  %v491_v11 = vadd.f32 %v486_v4, %v423_v2  ;;  %v626_v20 = vshrl.u32 %v625_v18, 7  ;;  %v319_v23 = vadd.f32 %v314_v12, %v251_v54  ;;  %v434_v63 = vmul.f32 %v429_v61, %v1142_v5  ;;  %v497_v2 = vld [vmem:[#allocation9 + $0x110] sm:$0x1] }
  0x9f   :  { %v541_v16 = vadd.f32 %v536_v14, %v473_v10  ;;  %v303_v58 = vadd.f32 %v298_v8, %v235_v53  ;;  %v450_v1 = vmul.f32 %v445_v24, %v1145_v6  ;;  %v502_v4 = vmul.f32 %v497_v2, %v1152_v27  ;;  %v613_v6 = vld [vmem:[#allocation9 + $0x2a0] sm:$0x1] }
  0xa0   :  { %v559_v17 = vadd.f32 %v554_v15, %v491_v11  ;;  %v627_v26 = vsub.s32 0, %v626_v20  ;;  %v387_v25 = vadd.f32 %v382_v60, %v319_v23  ;;  %v518_v7 = vmul.f32 %v513_v40, %v1155_v28 }
  0xa1   :  { %v371_v62 = vadd.f32 %v366_v59, %v303_v58  ;;  %v570_v11 = vmul.f32 %v565_v9, %v1162_v39  ;;  %v586_v14 = vmul.f32 %v581_v56, %v1165_v42 }
  0xa2   :  { %v602_v19 = vadd.f32 %v559_v17, %v541_v16  ;;  %v455_v41 = vadd.f32 %v450_v1, %v387_v25 }
  0xa3   :  { %v439_v3 = vadd.f32 %v434_v63, %v371_v62 }
  0xa4   :  { %v607_v22 = vadd.f32 %v602_v19, %v597_v21  ;;  %v523_v57 = vadd.f32 %v518_v7, %v455_v41 }
  0xa5   :  { %v507_v10 = vadd.f32 %v502_v4, %v439_v3 }
  0xa6   :  { %v628_v29 = vrot.slane %v607_v22, %v627_v26  ;;  %v591_v5 = vadd.f32 %v586_v14, %v523_v57 }
  0xa7   :  { %v575_v15 = vadd.f32 %v570_v11, %v507_v10 }
  0xa9   :  { %v618_v16 = vadd.f32 %v591_v5, %v575_v15 }
  0xab   :  { %v623_v17 = vadd.f32 %v618_v16, %v613_v6 }
  0xad   :  { %v707_v18 = vrot.slane %v623_v17, %v627_v26 }
 0x14c   :  { %v699_v30 = vpop.f32.mrb[0].mxu0 }
 0x14d   :  { %v700_v31 = vadd.f32 %v699_v30, %v628_v29  ;;  %v837_v32 = vpop.f32.mrb[1].mxu0 }
 0x14f   :  { %v703_v33 = vmax.f32 %v700_v31, 0.0 }
 0x151   :  { %847 = vmatmul.mubr.msk.f32.vlgmr.msra.gmra.mrb[0].mxu1 %vm629_vm1, %v703_v33 }
 0x224   :  { %v777_v19 = vpop.f32.mrb[0].mxu1 }
 0x225   :  { %v778_v27 = vadd.f32 %v777_v19, %v707_v18  ;;  %v848_v28 = vpop.f32.mrb[1].mxu1 }
 0x227   :  { %782 = vst.msk [vmem:[#allocation10] sm:$0x3] %vm781_vm2, %v778_v27 }
 0x228   :  { %960 = shalt.err (!%p957_p5)
}
 0x229   :  { %s961_s21 = scalar_lea.hbm %s1319_s4, 32 }
 0x22a   :  { %p962_p6 = scmp.ne.s32.totalorder %s1319_s4, %s961_s21  ;;  %p965_p7 = scmp.lt.u32.totalorder %s961_s21, %s1319_s4 }
 0x22c   :  { %p967_p8 = pnand %p965_p7, %p962_p6 }
 0x22e   :  { %970 = shalt.err (!%p967_p8)
}
 0x22f   :  { %792 = dma.vmem_to_hbm [thread:$0]  %s790_s17, 32, %s1319_s4, [#allocation4]  }
 0x230   :  { %977 = dma.done.wait [#allocation4], 32  }
 0x231   :  { %978 = vsyncadd [#allocation4], 4294967264 }
 0x232   :  { %796 = vsyncpa [#allocation3], 1 }
 0x233   :  { %797 = vsyncpa [#allocation8], 1 }
 0x234   :  { %798 = vsyncpa [#allocation4], 1 }
 0x235   :  { %799 = vsyncpa [#allocation5], 1 }

</bundles_post_ra>
